<compile_context>
chip_gen: v7x
topology: tpu7x:2x2x1
jax: 0.10.0
libtpu: 0.0.40
codegen_flags: <defaults>
</compile_context>

<pallas_src>
import jax
import jax.numpy as jnp
from jax.experimental import pallas as pl
from jax.experimental.pallas import tpu as pltpu


def _copy_kernel(x_ref, o_ref):
    # Straight identity copy of one (r_blk, c_blk) tile.
    o_ref[...] = x_ref[...]


def _round_down(x: int, m: int) -> int:
    return (x // m) * m


def _round_up(x: int, m: int) -> int:
    return ((x + m - 1) // m) * m


def _pick_tiles(rows: int, chw: int, itemsize: int, target_bytes: int):
    """Choose a (r_blk, c_blk) block shape.

    Last block dim must be a multiple of 128 or the full extent; second-to-last
    must be a multiple of the dtype-aware sublane tile or the full extent.
    """
    sublane = 8 * max(1, 4 // itemsize)   # 8 (f32), 16 (bf16/f16), 32 (int8/fp8)
    row_bytes = chw * itemsize

    if row_bytes * min(rows, sublane) <= target_bytes:
        # Lane-dense path: full CHW per block, grow rows toward the budget.
        c_blk = chw
        if rows <= sublane:
            r_blk = rows
        else:
            max_rows = max(sublane, _round_down(target_bytes // row_bytes, sublane))
            r_blk = min(max_rows, rows)
            if r_blk >= rows:
                r_blk = rows
        # Keep >=2 grid steps for large single-block cases so v7x's second
        # TensorCore participates; skip for tiny copies where the ~0.35us
        # per-step overhead would dominate on single-TC v5e/v6e.
        if r_blk == rows and rows >= 2 * sublane and rows * row_bytes >= (2 << 20):
            half = _round_up((rows + 1) // 2, sublane)
            if half < rows:
                r_blk = half
    else:
        # Fallback: a single sublane-tall full-CHW slab is already over budget,
        # so tile the CHW axis in multiples of 128 lanes.
        r_blk = rows if rows < sublane else sublane
        per_row = max(1, target_bytes // (r_blk * itemsize))
        c_blk = max(128, _round_down(per_row, 128))
        if c_blk >= chw:
            c_blk = chw
    return r_blk, c_blk


def expand_temporal_dim(x_seq: jax.Array, T: int) -> jax.Array:
    """(T*B, C, H, W) -> (T, B, C, H, W) via a lane-dense Pallas copy."""
    TB, C, H, W = x_seq.shape
    assert TB % T == 0, "leading dim must be divisible by T"
    B = TB // T
    CHW = C * H * W
    rows = TB
    itemsize = jnp.dtype(x_seq.dtype).itemsize

    # Generation-aware VMEM budget (v7x: 64 MiB/TC, v5e/v6e: 128 MiB).
    try:
        vmem_cap = int(pltpu.get_tpu_info().vmem_capacity_bytes)
    except Exception:
        vmem_cap = 64 << 20  # conservative fallback = v7x per-TC VMEM
    vmem_limit = int(min(vmem_cap // 2, 64 << 20))
    # 4x double-buffered footprint (2 in + 2 out) must fit with headroom.
    target_block_bytes = min(8 << 20, vmem_limit // 5)

    # Free, metadata-only reshape to a 2D lane-dense layout.
    x2 = x_seq.reshape(rows, CHW)

    r_blk, c_blk = _pick_tiles(rows, CHW, itemsize, target_block_bytes)
    grid = (pl.cdiv(rows, r_blk), pl.cdiv(CHW, c_blk))

    y2 = pl.pallas_call(
        _copy_kernel,
        out_shape=jax.ShapeDtypeStruct((rows, CHW), x_seq.dtype),
        grid=grid,
        in_specs=[pl.BlockSpec((r_blk, c_blk), lambda i, j: (i, j))],
        out_specs=pl.BlockSpec((r_blk, c_blk), lambda i, j: (i, j)),
        compiler_params=pltpu.CompilerParams(
            dimension_semantics=("parallel", "parallel"),
            vmem_limit_bytes=vmem_limit,
        ),
        cost_estimate=pl.CostEstimate(
            flops=0,
            transcendentals=0,
            bytes_accessed=2 * rows * CHW * itemsize,
        ),
    )(x2)

    # Free reshape back to the PyTorch output shape.
    return y2.reshape(T, B, C, H, W)


def expand_temporal_dim_reference(x_seq: jax.Array, T: int) -> jax.Array:
    TB = x_seq.shape[0]
    return x_seq.reshape((T, TB // T) + x_seq.shape[1:])


if __name__ == "__main__":
    T = 4
    B = 2
    C = 4
    H = 16
    W = 16

    key = jax.random.PRNGKey(0)
    x = jax.random.normal(key, (T * B, C, H, W), dtype=jnp.float32)

    y = expand_temporal_dim(x, T)
    y = jax.block_until_ready(y)

    y_ref = expand_temporal_dim_reference(x, T)

    assert y.shape == (T, B, C, H, W), y.shape
    assert y.dtype == x.dtype
    assert bool(jnp.array_equal(y, y_ref)), "mismatch vs. reshape reference"

    print("KERNEL_OK")
</pallas_src>

<mosaic_0001>
module attributes {stable_mosaic.version = 11 : i64} {
  func.func @_copy_kernel(%arg0: i32, %arg1: i32, %arg2: memref<8x1024xf32, #tpu.memory_space<vmem>>, %arg3: memref<8x1024xf32, #tpu.memory_space<vmem>>) attributes {dimension_semantics = [#tpu.dimension_semantics<parallel>, #tpu.dimension_semantics<parallel>], iteration_bounds = array<i64: 1, 1>, scalar_prefetch = 0 : i64, scratch_operands = 0 : i64, tpu.core_type = #tpu.core_type<tc>, window_params = [{transform_indices = @transform_0, window_bounds = array<i64: 8, 1024>}, {transform_indices = @transform_1, window_bounds = array<i64: 8, 1024>}]} {
    %c0 = arith.constant 0 : index
    %c0_0 = arith.constant 0 : index
    %0 = vector.load %arg2[%c0, %c0_0] : memref<8x1024xf32, #tpu.memory_space<vmem>>, vector<8x1024xf32>
    %c0_1 = arith.constant 0 : index
    %c0_2 = arith.constant 0 : index
    %1 = vector.load %arg3[%c0_1, %c0_2] : memref<8x1024xf32, #tpu.memory_space<vmem>>, vector<8x1024xf32>
    tpu.vector_store %arg3[%c0_1, %c0_2], %0 {strides = array<i32>} : memref<8x1024xf32, #tpu.memory_space<vmem>>, vector<8x1024xf32>,
    return
  }
  func.func @transform_0(%arg0: i32, %arg1: i32) -> (i32, i32) {
    %c0_i32 = arith.constant 0 : i32
    return %arg0, %arg1 : i32, i32
  }
  func.func @transform_1(%arg0: i32, %arg1: i32) -> (i32, i32) {
    %c0_i32 = arith.constant 0 : i32
    return %arg0, %arg1 : i32, i32
  }
}

</mosaic_0001>

<bundles_post_ra>
// kernel: tpu_custom_call.1
= control target key start
LH: loop header
LB: loop body
LE: loop exit
PB: predicated region body
PF: predicated region fallthrough
CT: control target
= control target key end

     0   :  { %6 = vsyncpa [#allocation3], 0  ;;  %s138_s0 = inlined_call_operand.hbm [shape: f32[8,1024], index: 0, kind: input, shape index: {}]   ;;  %s139_s1 = inlined_call_operand.hbm [shape: f32[8,1024], index: 1, kind: output, shape index: {}]  }
   0x1   :  { %7 = vsyncpa [#allocation4], 0  ;;  %s102_s6 = smov [#allocation2]   ;;  %s54_s10 = scalar_lea.hbm %s138_s0, 1024 }
   0x2   :  { %s14_s7 = sshll.u32 %s102_s6, 4  ;;  %p55_p0 = scmp.ne.s32.totalorder %s138_s0, %s54_s10  ;;  %s15_s7 = int_to_ptr.vmem [resolvable:$true] %s14_s7 }
   0x3   :  { %p58_p1 = scmp.lt.u32.totalorder %s54_s10, %s138_s0 }
   0x5   :  { %p60_p2 = pnand %p58_p1, %p55_p0 }
   0x7   :  { %63 = shalt.err (!%p60_p2)
}
   0x8   :  { %s64_s15 = scalar_lea.vmem %s15_s7, 1024  ;;  %p69_p4 = scmp.lt.s32.totalorder %s15_s7, %s15_s7 }
   0x9   :  { %p65_p3 = scmp.ne.s32.totalorder %s15_s7, %s64_s15  ;;  %p70_p5 = scmp.lt.s32.totalorder %s64_s15, %s64_s15 }
   0xb   :  { %p71_p6 = por %p70_p5, %p69_p4 }
   0xd   :  { %p72_p7 = pnand %p71_p6, %p65_p3 }
   0xf   :  { %75 = shalt.err (!%p72_p7)
}
  0x10   :  { %17 = dma.hbm_to_vmem [thread:$0]  %s138_s0, 1024, %s15_s7, [#allocation3]  }
  0x11   :  { %98 = dma.done.wait [#allocation3], 1024  }
  0x12   :  { %99 = vsyncadd [#allocation3], 4294966272  ;;  %s103_s18 = smov [#allocation5]   ;;  %v21_v0 = vld [vmem:[#allocation2] sm:$0xff]  ;;  %v22_v1 = vld [vmem:[#allocation2 + $0x8] sm:$0xff] }
  0x13   :  { %s43_s19 = sshll.u32 %s103_s18, 4  ;;  %v23_v2 = vld [vmem:[#allocation2 + $0x10] sm:$0xff]  ;;  %29 = vst [vmem:[#allocation5] sm:$0xff] %v21_v0  ;;  %30 = vst [vmem:[#allocation5 + $0x8] sm:$0xff] %v22_v1  ;;  %v24_v3 = vld [vmem:[#allocation2 + $0x18] sm:$0xff]  ;;  %s44_s19 = int_to_ptr.vmem [resolvable:$true] %s43_s19 }
  0x14   :  { %31 = vst [vmem:[#allocation5 + $0x10] sm:$0xff] %v23_v2  ;;  %v25_v4 = vld [vmem:[#allocation2 + $0x20] sm:$0xff]  ;;  %v26_v5 = vld [vmem:[#allocation2 + $0x28] sm:$0xff]  ;;  %32 = vst [vmem:[#allocation5 + $0x18] sm:$0xff] %v24_v3  ;;  %s76_s0 = scalar_lea.vmem %s44_s19, 1024  ;;  %p81_p9 = scmp.lt.s32.totalorder %s44_s19, %s44_s19 }
  0x15   :  { %33 = vst [vmem:[#allocation5 + $0x20] sm:$0xff] %v25_v4  ;;  %34 = vst [vmem:[#allocation5 + $0x28] sm:$0xff] %v26_v5  ;;  %v27_v6 = vld [vmem:[#allocation2 + $0x30] sm:$0xff]  ;;  %v28_v7 = vld [vmem:[#allocation2 + $0x38] sm:$0xff]  ;;  %p77_p8 = scmp.ne.s32.totalorder %s44_s19, %s76_s0  ;;  %p82_p10 = scmp.lt.s32.totalorder %s76_s0, %s76_s0 }
  0x16   :  { %35 = vst [vmem:[#allocation5 + $0x30] sm:$0xff] %v27_v6  ;;  %36 = vst [vmem:[#allocation5 + $0x38] sm:$0xff] %v28_v7 }
  0x17   :  { %p83_p11 = por %p82_p10, %p81_p9 }
  0x19   :  { %p84_p12 = pnand %p83_p11, %p77_p8 }
  0x1b   :  { %87 = shalt.err (!%p84_p12)
}
  0x1c   :  { %s88_s22 = scalar_lea.hbm %s139_s1, 1024 }
  0x1d   :  { %p89_p13 = scmp.ne.s32.totalorder %s139_s1, %s88_s22  ;;  %p92_p0 = scmp.lt.u32.totalorder %s88_s22, %s139_s1 }
  0x1f   :  { %p94_p1 = pnand %p92_p0, %p89_p13 }
  0x21   :  { %97 = shalt.err (!%p94_p1)
}
  0x22   :  { %46 = dma.vmem_to_hbm [thread:$0]  %s44_s19, 1024, %s139_s1, [#allocation4]  }
  0x23   :  { %100 = dma.done.wait [#allocation4], 1024  }
  0x24   :  { %101 = vsyncadd [#allocation4], 4294966272 }
  0x25   :  { %50 = vsyncpa [#allocation3], 1 }
  0x26   :  { %51 = vsyncpa [#allocation4], 1 }

</bundles_post_ra>
